<compile_context>
chip_gen: v5e
topology: v5e:2x2
jax: 0.10.0
libtpu: 0.0.40
codegen_flags: <defaults>
</compile_context>

<pallas_src>
import jax
import jax.numpy as jnp
from jax.experimental import pallas as pl
from jax.experimental.pallas import tpu as pltpu


def _discriminator_kernel(x_ref, w1_ref, w2_ref, w3_ref, o_ref):
    # x_ref: (8, TB) feature-major; rows = [pos, vel, 1 (bias lane), 0, 0, 0, 0, 0]
    x = x_ref[...]

    # Layer 1 (+ b1 folded): (72, 8) @ (8, TB) -> (72, TB).  Row 64 becomes the
    # constant 1 after relu (weight row [0, 0, 1, 0...]); rows 65..71 are 0.
    h1 = jnp.maximum(
        jnp.dot(w1_ref[...], x, preferred_element_type=jnp.float32), 0.0)

    # Layer 2 (+ b2 folded via the 1-row): (72, 72) @ (72, TB) -> (72, TB).
    # Row 64 of W2p is e_64 so the constant 1 survives for the layer-3 bias.
    h2 = jnp.maximum(
        jnp.dot(w2_ref[...], h1, preferred_element_type=jnp.float32), 0.0)

    # Layer 3 (+ b3 folded): (8, 72) @ (72, TB) -> (8, TB); row 0 is the logit.
    logits = jnp.dot(w3_ref[...], h2, preferred_element_type=jnp.float32)[0:1, :]

    # sigmoid: exp on the EUP + reciprocal (exact, to stay inside 1e-4 tol).
    o_ref[...] = pl.reciprocal(1.0 + jnp.exp(-logits))


def _round_up(n, m):
    return -(-n // m) * m


def _pack_params(params):
    """Pack PyTorch-layout params into MXU-friendly, bias-folded weight slabs."""
    f32 = jnp.float32
    w1 = params["w1"].astype(f32)               # (64, 2)
    b1 = params["b1"].astype(f32)               # (64,)
    w2 = params["w2"].astype(f32)               # (64, 64)
    b2 = params["b2"].astype(f32)               # (64,)
    w3 = params["w3"].astype(f32).reshape(64)   # (1, 64) -> (64,)
    b3 = params["b3"].astype(f32).reshape(())   # (1,)    -> scalar

    w1p = (jnp.zeros((72, 8), f32)
           .at[:64, :2].set(w1)
           .at[:64, 2].set(b1)
           .at[64, 2].set(1.0))                 # row 64 regenerates the "1" row
    w2p = (jnp.zeros((72, 72), f32)
           .at[:64, :64].set(w2)
           .at[:64, 64].set(b2)
           .at[64, 64].set(1.0))                # keep the "1" row alive
    w3p = (jnp.zeros((8, 72), f32)
           .at[0, :64].set(w3)
           .at[0, 64].set(b3))
    return w1p, w2p, w3p


def discriminator_forward(state, params, *, block_b=8192):
    """state: (B, 2) float32.  params in PyTorch layout: w (out,in), b (out,).

    Returns (B, 1) float32, matching Discriminator.forward.
    """
    B = state.shape[0]
    assert state.shape[1] == 2

    # Large lane-aligned batch tile (amortizes per-grid-step overhead), capped
    # at the padded batch for small inputs.
    tb = min(_round_up(block_b, 128), _round_up(B, 128))
    b_pad = _round_up(B, tb)
    nb = b_pad // tb

    w1p, w2p, w3p = _pack_params(params)

    # Feature-major, MXU-ready input slab: rows [pos, vel, 1(bias), 0 x 5].
    # Single small fused prep op; padded batch columns are zero (+ ones row)
    # and discarded after the kernel.
    x = (jnp.zeros((8, b_pad), jnp.float32)
         .at[2, :].set(1.0)
         .at[0:2, :B].set(state.astype(jnp.float32).T))

    n_w = 72 * 8 + 72 * 72 + 8 * 72
    cost = pl.CostEstimate(
        flops=2 * b_pad * (8 * 72 + 72 * 72 + 72 * 8),
        transcendentals=b_pad,
        bytes_accessed=4 * (8 * b_pad + b_pad + nb * n_w),
    )

    out = pl.pallas_call(
        _discriminator_kernel,
        out_shape=jax.ShapeDtypeStruct((1, b_pad), jnp.float32),
        grid=(nb,),
        in_specs=[
            pl.BlockSpec((8, tb), lambda i: (0, i)),      # batch tile (lane-dense)
            pl.BlockSpec((72, 8), lambda i: (0, 0)),      # W1p (+b1), resident
            pl.BlockSpec((72, 72), lambda i: (0, 0)),     # W2p (+b2), resident
            pl.BlockSpec((8, 72), lambda i: (0, 0)),      # W3p (+b3), resident
        ],
        out_specs=pl.BlockSpec((1, tb), lambda i: (0, i)),  # lane-dense output
        compiler_params=pltpu.CompilerParams(
            dimension_semantics=("parallel",),            # batch axis independent
            vmem_limit_bytes=32 * 1024 * 1024,            # safe on v5e/v6e/v7x
        ),
        cost_estimate=cost,
    )(x, w1p, w2p, w3p)

    # Back to the PyTorch (B, 1) output shape.
    return out[:, :B].T


def init_params(key):
    """PyTorch nn.Linear default init (U[-1/sqrt(fan_in), +]), PyTorch layout."""
    def linear(key, fan_in, fan_out):
        kw, kb = jax.random.split(key)
        bound = 1.0 / (fan_in ** 0.5)
        w = jax.random.uniform(kw, (fan_out, fan_in), jnp.float32, -bound, bound)
        b = jax.random.uniform(kb, (fan_out,), jnp.float32, -bound, bound)
        return w, b

    k1, k2, k3 = jax.random.split(key, 3)
    w1, b1 = linear(k1, 2, 64)
    w2, b2 = linear(k2, 64, 64)
    w3, b3 = linear(k3, 64, 1)
    return dict(w1=w1, b1=b1, w2=w2, b2=b2, w3=w3, b3=b3)


def _reference_forward(state, params):
    hp = jax.lax.Precision.HIGHEST
    h1 = jax.nn.relu(jnp.dot(state, params["w1"].T, precision=hp) + params["b1"])
    h2 = jax.nn.relu(jnp.dot(h1, params["w2"].T, precision=hp) + params["b2"])
    return jax.nn.sigmoid(jnp.dot(h2, params["w3"].T, precision=hp) + params["b3"])


if __name__ == "__main__":
    key = jax.random.PRNGKey(0)
    k_params, k_state, k_big = jax.random.split(key, 3)

    params = init_params(k_params)

    # MountainCar state is 2-D (position, velocity); small batch of 8.
    state = jax.random.normal(k_state, (8, 2), dtype=jnp.float32)
    out = jax.block_until_ready(discriminator_forward(state, params))
    ref = _reference_forward(state, params)
    assert out.shape == (8, 1)
    assert jnp.allclose(out, ref, atol=1e-4, rtol=1e-4)

    # Larger batch exercising the multi-tile (pipelined / parallel) grid.
    big = jax.random.normal(k_big, (1024, 2), dtype=jnp.float32)
    out_big = jax.block_until_ready(discriminator_forward(big, params, block_b=256))
    ref_big = _reference_forward(big, params)
    assert out_big.shape == (1024, 1)
    assert jnp.allclose(out_big, ref_big, atol=1e-4, rtol=1e-4)

    print("KERNEL_OK")
</pallas_src>

<mosaic_0001>
module attributes {stable_mosaic.version = 11 : i64} {
  func.func @_discriminator_kernel(%arg0: i32, %arg1: memref<8x128xf32, #tpu.memory_space<vmem>>, %arg2: memref<72x8xf32, #tpu.memory_space<vmem>>, %arg3: memref<72x72xf32, #tpu.memory_space<vmem>>, %arg4: memref<8x72xf32, #tpu.memory_space<vmem>>, %arg5: memref<1x128xf32, #tpu.memory_space<vmem>>) attributes {dimension_semantics = [#tpu.dimension_semantics<parallel>], iteration_bounds = array<i64: 1>, scalar_prefetch = 0 : i64, scratch_operands = 0 : i64, tpu.core_type = #tpu.core_type<tc>, window_params = [{transform_indices = @transform_0, window_bounds = array<i64: 8, 128>}, {pipeline_mode = #tpu.pipeline_mode<synchronous>, transform_indices = @transform_1, window_bounds = array<i64: 72, 8>}, {pipeline_mode = #tpu.pipeline_mode<synchronous>, transform_indices = @transform_2, window_bounds = array<i64: 72, 72>}, {pipeline_mode = #tpu.pipeline_mode<synchronous>, transform_indices = @transform_3, window_bounds = array<i64: 8, 72>}, {transform_indices = @transform_4, window_bounds = array<i64: 1, 128>}]} {
    %c0 = arith.constant 0 : index
    %c0_0 = arith.constant 0 : index
    %0 = vector.load %arg1[%c0, %c0_0] : memref<8x128xf32, #tpu.memory_space<vmem>>, vector<8x128xf32>
    %c0_1 = arith.constant 0 : index
    %c0_2 = arith.constant 0 : index
    %1 = vector.load %arg2[%c0_1, %c0_2] : memref<72x8xf32, #tpu.memory_space<vmem>>, vector<72x8xf32>
    %cst = arith.constant dense<0.000000e+00> : vector<72x128xf32>
    %2 = tpu.matmul %1, %0, %cst {dimension_numbers = #tpu.dot_dimension_numbers<[1], [0], [0], [1], [0, 0, 1, 1], [], []>} : vector<72x8xf32>, vector<8x128xf32>, vector<72x128xf32> -> vector<72x128xf32>
    %cst_3 = arith.constant 0.000000e+00 : f32
    %3 = vector.broadcast %cst_3 : f32 to vector<72x128xf32>
    %4 = arith.maximumf %2, %3 : vector<72x128xf32>
    %c0_4 = arith.constant 0 : index
    %c0_5 = arith.constant 0 : index
    %5 = vector.load %arg3[%c0_4, %c0_5] : memref<72x72xf32, #tpu.memory_space<vmem>>, vector<72x72xf32>
    %cst_6 = arith.constant dense<0.000000e+00> : vector<72x128xf32>
    %6 = tpu.matmul %5, %4, %cst_6 {dimension_numbers = #tpu.dot_dimension_numbers<[1], [0], [0], [1], [0, 0, 1, 1], [], []>} : vector<72x72xf32>, vector<72x128xf32>, vector<72x128xf32> -> vector<72x128xf32>
    %cst_7 = arith.constant 0.000000e+00 : f32
    %7 = vector.broadcast %cst_7 : f32 to vector<72x128xf32>
    %8 = arith.maximumf %6, %7 : vector<72x128xf32>
    %c0_8 = arith.constant 0 : index
    %c0_9 = arith.constant 0 : index
    %9 = vector.load %arg4[%c0_8, %c0_9] : memref<8x72xf32, #tpu.memory_space<vmem>>, vector<8x72xf32>
    %cst_10 = arith.constant dense<0.000000e+00> : vector<8x128xf32>
    %10 = tpu.matmul %9, %8, %cst_10 {dimension_numbers = #tpu.dot_dimension_numbers<[1], [0], [0], [1], [0, 0, 1, 1], [], []>} : vector<8x72xf32>, vector<72x128xf32>, vector<8x128xf32> -> vector<8x128xf32>
    %11 = vector.extract_strided_slice %10 {offsets = [0, 0], sizes = [1, 128], strides = [1, 1]} : vector<8x128xf32> to vector<1x128xf32>
    %cst_11 = arith.constant 0.000000e+00 : f32
    %12 = vector.broadcast %cst_11 : f32 to vector<1x128xf32>
    %13 = arith.subf %12, %11 : vector<1x128xf32>
    %14 = math.exp %13 : vector<1x128xf32>
    %cst_12 = arith.constant 1.000000e+00 : f32
    %15 = vector.broadcast %cst_12 : f32 to vector<1x128xf32>
    %16 = arith.addf %15, %14 : vector<1x128xf32>
    %17 = tpu.reciprocal %16 : vector<1x128xf32> -> vector<1x128xf32>
    %c0_13 = arith.constant 0 : index
    %c0_14 = arith.constant 0 : index
    %18 = vector.load %arg5[%c0_13, %c0_14] : memref<1x128xf32, #tpu.memory_space<vmem>>, vector<1x128xf32>
    tpu.vector_store %arg5[%c0_13, %c0_14], %17 {strides = array<i32>} : memref<1x128xf32, #tpu.memory_space<vmem>>, vector<1x128xf32>,
    return
  }
  func.func @transform_0(%arg0: i32) -> (i32, i32) {
    %c0_i32 = arith.constant 0 : i32
    %c0_i32_0 = arith.constant 0 : i32
    return %c0_i32, %arg0 : i32, i32
  }
  func.func @transform_1(%arg0: i32) -> (i32, i32) {
    %c0_i32 = arith.constant 0 : i32
    %c0_i32_0 = arith.constant 0 : i32
    %c0_i32_1 = arith.constant 0 : i32
    return %c0_i32, %c0_i32_0 : i32, i32
  }
  func.func @transform_2(%arg0: i32) -> (i32, i32) {
    %c0_i32 = arith.constant 0 : i32
    %c0_i32_0 = arith.constant 0 : i32
    %c0_i32_1 = arith.constant 0 : i32
    return %c0_i32, %c0_i32_0 : i32, i32
  }
  func.func @transform_3(%arg0: i32) -> (i32, i32) {
    %c0_i32 = arith.constant 0 : i32
    %c0_i32_0 = arith.constant 0 : i32
    %c0_i32_1 = arith.constant 0 : i32
    return %c0_i32, %c0_i32_0 : i32, i32
  }
  func.func @transform_4(%arg0: i32) -> (i32, i32) {
    %c0_i32 = arith.constant 0 : i32
    %c0_i32_0 = arith.constant 0 : i32
    return %c0_i32, %arg0 : i32, i32
  }
}

</mosaic_0001>

<bundles_post_ra>
// kernel: tpu_custom_call.1
= control target key start
LH: loop header
LB: loop body
LE: loop exit
PB: predicated region body
PF: predicated region fallthrough
CT: control target
= control target key end

     0   :  { %9 = vsyncpa [#allocation3], 0  ;;  %s469_s0 = inlined_call_operand.vmem [shape: f32[8,128], index: 0, kind: input, shape index: {}]   ;;  %s470_s1 = inlined_call_operand.vmem [shape: f32[72,8], index: 1, kind: input, shape index: {}]   ;;  %s471_s2 = inlined_call_operand.vmem [shape: f32[72,72], index: 2, kind: input, shape index: {}]   ;;  %s472_s3 = inlined_call_operand.hbm [shape: f32[8,72], index: 3, kind: input, shape index: {}]   ;;  %s473_s4 = inlined_call_operand.hbm [shape: f32[1,128], index: 4, kind: output, shape index: {}]  }
   0x1   :  { %10 = vsyncpa [#allocation4], 0  ;;  %s22_s17 = sshll.u32 %s472_s3, 4  ;;  %s360_s18 = smov [#allocation2]   ;;  %s23_s17 = int_to_ptr.hbm [resolvable:$true] %s22_s17 }
   0x2   :  { %s24_s19 = sshll.u32 %s360_s18, 4  ;;  %s25_s19 = int_to_ptr.vmem [resolvable:$true] %s24_s19 }
   0x3   :  { %27 = dma.hbm_to_vmem [thread:$0]  %s23_s17, 128, %s25_s19, [#allocation3]  }
   0x4   :  { %356 = dma.done.wait [#allocation3], 128  }
   0x5   :  { %357 = vsyncadd [#allocation3], 4294967168  ;;  %vm42_vm0 = vcmask 64512   ;;  %v32_v0 = vld [vmem:[%s469_s0] sm:$0xff]  ;;  %v39_v2 = vld [vmem:[%s470_s1 + $0x30] sm:$0xff]  ;;  %vm132_vm1 = vcmask 588800  }
   0x6   :  { %v33_v1 = vld [vmem:[%s470_s1] sm:$0xff]  ;;  %85 = vmatpush.msra.mxu0 %v32_v0  ;;  %292 = vmatpush.msra.mxu2 %v32_v0  ;;  %v34_v3 = vld [vmem:[%s470_s1 + $0x8] sm:$0xff]  ;;  %v40_v4 = vld [vmem:[%s470_s1 + $0x38] sm:$0xff]  ;;  %s263_s30 = sshll.u32 %s473_s4, 4  ;;  %s264_s30 = int_to_ptr.hbm [resolvable:$true] %s263_s30 }
   0x7   :  { %273 = vmatmul.msk.f32.vlgmr.msra.gmra.mxu0 %vm42_vm0, %v33_v1  ;;  %279 = vmatmul.msk.f32.vlgmr.msra.gmra.mxu2 %vm42_vm0, %v39_v2  ;;  %v35_v5 = vld [vmem:[%s470_s1 + $0x10] sm:$0xff]  ;;  %v41_v6 = vld [vmem:[%s470_s1 + $0x40] sm:$0xff]  ;;  %v36_v7 = vld [vmem:[%s470_s1 + $0x18] sm:$0xff] }
   0x8   :  { %v37_v8 = vld [vmem:[%s470_s1 + $0x20] sm:$0xff]  ;;  %v38_v9 = vld [vmem:[%s470_s1 + $0x28] sm:$0xff]  ;;  %v129_v30 = vld [vmem:[%s471_s2 + $0x30] sm:$0xff] }
   0x9   :  { %v128_v28 = vld [vmem:[%s471_s2 + $0x28] sm:$0xff]  ;;  %v123_v29 = vld [vmem:[%s471_s2] sm:$0xff]  ;;  %v130_v32 = vld [vmem:[%s471_s2 + $0x38] sm:$0xff] }
   0xa   :  { %v124_v31 = vld [vmem:[%s471_s2 + $0x8] sm:$0xff]  ;;  %v125_v33 = vld [vmem:[%s471_s2 + $0x10] sm:$0xff]  ;;  %v131_v34 = vld [vmem:[%s471_s2 + $0x40] sm:$0xff] }
   0xb   :  { %v126_v35 = vld [vmem:[%s471_s2 + $0x18] sm:$0xff]  ;;  %v127_v36 = vld [vmem:[%s471_s2 + $0x20] sm:$0xff]  ;;  %s361_s2 = smov [#allocation5]  }
   0xc   :  { %v213_v55 = vld [vmem:[#allocation2] sm:$0xff]  ;;  %s261_s0 = sshll.u32 %s361_s2, 4  ;;  %s262_s0 = int_to_ptr.vmem [resolvable:$true] %s261_s0 }
   0xf   :  { %274 = vmatmul.msk.f32.gmra.mxu0 %vm42_vm0, %v34_v3  ;;  %280 = vmatmul.msk.f32.gmra.mxu2 %vm42_vm0, %v40_v4 }
  0x17   :  { %275 = vmatmul.msk.f32.gmra.mxu0 %vm42_vm0, %v35_v5  ;;  %281 = vmatmul.msk.f32.gmra.mxu2 %vm42_vm0, %v41_v6 }
  0x1f   :  { %276 = vmatmul.msk.f32.gmra.mxu0 %vm42_vm0, %v36_v7 }
  0x27   :  { %277 = vmatmul.msk.f32.gmra.mxu0 %vm42_vm0, %v37_v8 }
  0x2f   :  { %278 = vmatmul.msk.f32.gmra.mxu0 %vm42_vm0, %v38_v9 }
  0x84   :  { %v87_v10 = vpop.f32.mrf.mxu0 }
  0x85   :  { %v114_v27 = vmax.f32 %v87_v10, 0.0 }
  0x8a   :  { %v105_v11 = vpop.f32.mrf.mxu2 }
  0x8b   :  { %v120_v19 = vmax.f32 %v105_v11, 0.0 }
  0x8c   :  { %v90_v12 = vpop.f32.mrf.mxu0 }
  0x8d   :  { %v115_v26 = vmax.f32 %v90_v12, 0.0 }
  0x92   :  { %v108_v13 = vpop.f32.mrf.mxu2 }
  0x93   :  { %v121_v16 = vmax.f32 %v108_v13, 0.0 }
  0x94   :  { %v93_v14 = vpop.f32.mrf.mxu0 }
  0x95   :  { %v116_v25 = vmax.f32 %v93_v14, 0.0 }
  0x9a   :  { %v111_v15 = vpop.f32.mrf.mxu2 }
  0x9b   :  { %v122_v17 = vmax.f32 %v111_v15, 0.0 }
  0x9c   :  { %v96_v18 = vpop.f32.mrf.mxu0 }
  0x9d   :  { %167 = vmatpush.msra.mxu1 %v122_v17  ;;  %293 = vmatpush.msra.mxu3 %v122_v17  ;;  %v117_v24 = vmax.f32 %v96_v18, 0.0 }
  0x9f   :  { %168 = vmatpush.msra.mxu1 %v121_v16  ;;  %294 = vmatpush.msra.mxu3 %v121_v16 }
  0xa1   :  { %169 = vmatpush.msra.mxu1 %v120_v19  ;;  %295 = vmatpush.msra.mxu3 %v120_v19 }
  0xa4   :  { %v99_v20 = vpop.f32.mrf.mxu0 }
  0xa5   :  { %v118_v23 = vmax.f32 %v99_v20, 0.0 }
  0xac   :  { %v102_v21 = vpop.f32.mrf.mxu0 }
  0xad   :  { %v119_v22 = vmax.f32 %v102_v21, 0.0 }
  0xaf   :  { %170 = vmatpush.msra.mxu1 %v119_v22  ;;  %296 = vmatpush.msra.mxu3 %v119_v22 }
  0xb1   :  { %171 = vmatpush.msra.mxu1 %v118_v23  ;;  %297 = vmatpush.msra.mxu3 %v118_v23 }
  0xb3   :  { %172 = vmatpush.msra.mxu1 %v117_v24  ;;  %298 = vmatpush.msra.mxu3 %v117_v24 }
  0xb5   :  { %173 = vmatpush.msra.mxu1 %v116_v25  ;;  %299 = vmatpush.msra.mxu3 %v116_v25 }
  0xb7   :  { %174 = vmatpush.msra.mxu1 %v115_v26  ;;  %300 = vmatpush.msra.mxu3 %v115_v26 }
  0xb9   :  { %175 = vmatpush.msra.mxu1 %v114_v27  ;;  %301 = vmatpush.msra.mxu3 %v114_v27 }
  0xba   :  { %287 = vmatmul.msk.f32.vlgmr.msra.gmra.mxu3 %vm132_vm1, %v128_v28  ;;  %282 = vmatmul.msk.f32.vlgmr.msra.gmra.mxu1 %vm132_vm1, %v123_v29 }
  0xc2   :  { %288 = vmatmul.msk.f32.gmra.mxu3 %vm132_vm1, %v129_v30  ;;  %283 = vmatmul.msk.f32.gmra.mxu1 %vm132_vm1, %v124_v31 }
  0xca   :  { %289 = vmatmul.msk.f32.gmra.mxu3 %vm132_vm1, %v130_v32  ;;  %284 = vmatmul.msk.f32.gmra.mxu1 %vm132_vm1, %v125_v33 }
  0xd2   :  { %290 = vmatmul.msk.f32.gmra.mxu3 %vm132_vm1, %v131_v34  ;;  %285 = vmatmul.msk.f32.gmra.mxu1 %vm132_vm1, %v126_v35 }
  0xda   :  { %286 = vmatmul.msk.f32.gmra.mxu1 %vm132_vm1, %v127_v36 }
 0x137   :  { %v177_v37 = vpop.f32.mrf.mxu1 }
 0x138   :  { %v204_v54 = vmax.f32 %v177_v37, 0.0 }
 0x13d   :  { %v192_v38 = vpop.f32.mrf.mxu3 }
 0x13e   :  { %v209_v49 = vmax.f32 %v192_v38, 0.0 }
 0x13f   :  { %v180_v39 = vpop.f32.mrf.mxu1 }
 0x140   :  { %v205_v53 = vmax.f32 %v180_v39, 0.0 }
 0x145   :  { %v195_v40 = vpop.f32.mrf.mxu3 }
 0x146   :  { %v210_v48 = vmax.f32 %v195_v40, 0.0 }
 0x147   :  { %v183_v41 = vpop.f32.mrf.mxu1 }
 0x148   :  { %v206_v52 = vmax.f32 %v183_v41, 0.0 }
 0x14d   :  { %v198_v42 = vpop.f32.mrf.mxu3 }
 0x14e   :  { %v211_v46 = vmax.f32 %v198_v42, 0.0 }
 0x14f   :  { %v186_v43 = vpop.f32.mrf.mxu1 }
 0x150   :  { %v207_v51 = vmax.f32 %v186_v43, 0.0 }
 0x155   :  { %v201_v44 = vpop.f32.mrf.mxu3 }
 0x156   :  { %v212_v45 = vmax.f32 %v201_v44, 0.0 }
 0x157   :  { %v189_v47 = vpop.f32.mrf.mxu1 }
 0x158   :  { %224 = vmatpush.msrb.mxu2 %v212_v45  ;;  %v208_v50 = vmax.f32 %v189_v47, 0.0 }
 0x15a   :  { %225 = vmatpush.msrb.mxu2 %v211_v46 }
 0x15c   :  { %226 = vmatpush.msrb.mxu2 %v210_v48 }
 0x15e   :  { %227 = vmatpush.msrb.mxu2 %v209_v49 }
 0x160   :  { %228 = vmatpush.msrb.mxu2 %v208_v50 }
 0x162   :  { %229 = vmatpush.msrb.mxu2 %v207_v51 }
 0x164   :  { %230 = vmatpush.msrb.mxu2 %v206_v52 }
 0x166   :  { %231 = vmatpush.msrb.mxu2 %v205_v53 }
 0x168   :  { %232 = vmatpush.msrb.mxu2 %v204_v54 }
 0x169   :  { %291 = vmatmul.msk.f32.vlgmr.msrb.gmra.mxu2 %vm132_vm1, %v213_v55 }
 0x1ec   :  { %v234_v56 = vpop.f32.mrf.mxu2 }
 0x1ed   :  { %v237_v57 = vsub.f32 0.0, %v234_v56 }
 0x1ef   :  { %v238_v58 = vmul.f32 1.442695, %v237_v57 }
 0x1f1   :  { %304 = vpow2.f32 %v238_v58 }
 0x1f7   :  { %v305_v59 = vpop.eup %304 }
 0x1f8   :  { %v240_v60 = vadd.f32 1.0, %v305_v59 }
 0x1fa   :  { %306 = vrcp.f32 %v240_v60  ;;  %v252_v0 = vand.u32 2147483648, %v240_v60  ;;  %v250_v2 = vand.u32 2147483647, %v240_v60  ;;  %vm246_vm3 = vweird.f32 %v240_v60 }
 0x1fc   :  { %v253_v4 = vor.u32 1.1754944e-38, %v252_v0  ;;  %vm251_vm5 = vcmp.eq.f32.partialorder %v250_v2, 8.507059e+37 }
 0x200   :  { %v307_v61 = vpop.eup %306 }
 0x201   :  { %v242_v62 = vmul.f32 %v307_v61, %v240_v60  ;;  %vm247_vm2 = vweird.f32 %v307_v61 }
 0x202   :  { %vm248_vm4 = vmor %vm246_vm3, %vm247_vm2 }
 0x203   :  { %v243_v63 = vsub.f32 1.0, %v242_v62 }
 0x205   :  { %v244_v1 = vmul.f32 %v307_v61, %v243_v63 }
 0x207   :  { %v245_v3 = vadd.f32 %v307_v61, %v244_v1 }
 0x209   :  { %v249_v5 = vsel %vm248_vm4, %v307_v61, %v245_v3 }
 0x20a   :  { %v254_v6 = vsel %vm251_vm5, %v253_v4, %v249_v5 }
 0x20b   :  { %255 = vst [vmem:[#allocation5] sm:$0x1] %v254_v6 }
 0x20c   :  { %266 = dma.vmem_to_hbm [thread:$0]  %s262_s0, 16, %s264_s30, [#allocation4]  }
 0x20d   :  { %358 = dma.done.wait [#allocation4], 16  }
 0x20e   :  { %359 = vsyncadd [#allocation4], 4294967280 }
 0x20f   :  { %271 = vsyncpa [#allocation3], 1 }
 0x210   :  { %272 = vsyncpa [#allocation4], 1 }

</bundles_post_ra>
